<compile_context>
chip_gen: v7x
topology: tpu7x:2x2x1
jax: 0.10.0
libtpu: 0.0.40
codegen_flags: <defaults>
</compile_context>

<pallas_src>
import functools

import jax
import jax.numpy as jnp
from jax.experimental import pallas as pl
from jax.experimental.pallas import tpu as pltpu


def _round_up(x, m):
    return (x + m - 1) // m * m


def _cdiv(a, b):
    return (a + b - 1) // b


def _tensorcores_per_chip():
    # v4 / v5p / v7x expose 2 TensorCores per device (megacore); v5e / v6e 1.
    # Best effort only: a wrong answer affects performance, not correctness.
    try:
        kind = jax.devices()[0].device_kind.lower().replace(" ", "")
    except Exception:  # pragma: no cover
        return 1
    return 2 if any(tag in kind for tag in ("v7", "7x", "v4", "v5p")) else 1


def _pool_kernel(seg_ref, frag_ref, flag_ref, idx_ref, emb_ref, *rest, ts, tf,
                 n_f, w_max, apply_scale):
    # seg/frag/flag: prefetched flat per-core work lists (SMEM).
    if apply_scale:
        inv_ref, out_ref, acc_ref = rest
    else:
        inv_ref = None
        out_ref, acc_ref = rest

    c = pl.program_id(0)          # core slice ("parallel")
    w = pl.program_id(2)          # position in this core's work list
    nw = pl.num_programs(2)
    base = c * w_max

    j = seg_ref[base + w]                                   # segment tile id
    prev_j = seg_ref[base + jnp.maximum(w - 1, 0)]
    next_j = seg_ref[base + jnp.minimum(w + 1, nw - 1)]
    is_first = jnp.logical_or(w == 0, j != prev_j)          # first visit of j
    is_last = jnp.logical_or(w == nw - 1, j != next_j)      # last visit of j
    do_work = flag_ref[base + w] != 0                       # real work step

    @pl.when(do_work)
    def _():
        emb = emb_ref[...]
        if n_f % tf != 0:
            # Ragged last fragment tile: zero the garbage rows (a zero one-hot
            # column does NOT protect against NaN garbage: 0*NaN = NaN).
            ft = frag_ref[base + w]
            valid_rows = jnp.minimum(n_f - ft * tf, tf)
            row_ids = jax.lax.broadcasted_iota(jnp.int32, (tf, 1), 0)
            emb = jnp.where(row_ids < valid_rows, emb, 0)

        # One-hot scatter as a matmul: row = local segment id, col = fragment.
        # Padded indices are -1, so their one-hot column is all zero.
        local = idx_ref[...] - j * ts                        # (1, TF) int32
        rows = jax.lax.broadcasted_iota(jnp.int32, (ts, 1), 0)
        onehot = (rows == local).astype(emb.dtype)           # native MXU dtype
        contrib = jnp.dot(onehot, emb, preferred_element_type=jnp.float32)

        @pl.when(is_first)
        def _():
            acc_ref[...] = contrib                           # write, no zero+RMW

        @pl.when(jnp.logical_not(is_first))
        def _():
            acc_ref[...] += contrib

    @pl.when(jnp.logical_and(is_first, jnp.logical_not(do_work)))
    def _():
        # Empty segment tiles still produce zeros.
        acc_ref[...] = jnp.zeros_like(acc_ref)

    @pl.when(is_last)
    def _():
        result = acc_ref[...]
        if apply_scale:
            result = result * inv_ref[...]                   # fused 'mean'
        out_ref[...] = result.astype(out_ref.dtype)


def _build_worklist(idx, ns, nf, ts, tf, num_cores):
    """Per-core flat work lists over (segment-tile, fragment-tile) visits.

    Segment tiles are partitioned across cores (disjoint output ownership); a
    core visits, for each owned segment tile, exactly the fragment tiles its
    contiguous (sorted) fragment range overlaps.  Per entry:
      seg  : segment tile id (output block).  Padding repeats the last owned
             tile so the resident output block never changes on no-op steps.
      frag : fragment tile id (input block).  No-op / padding entries repeat a
             previously used tile so no new DMA is issued.
      flag : 1 for real work (one-hot matmul), 0 for no-op / padding.
    Returns int32 arrays of shape (num_cores * w_max,) and the static w_max.
    """
    bounds = jnp.searchsorted(
        idx, jnp.arange(ns + 1, dtype=jnp.int32) * ts, side='left'
    ).astype(jnp.int32)
    s, e = bounds[:-1], bounds[1:]
    nonempty = e > s
    t_start = jnp.clip(s // tf, 0, nf - 1)                   # first frag tile
    t_last = jnp.where(nonempty,
                       jnp.clip((e - 1) // tf, 0, nf - 1), t_start)
    # Most recently used fragment tile before tile j (for DMA-free no-ops).
    carry = jax.lax.cummax(jnp.where(nonempty, t_last, -1), axis=0)
    carry = jnp.where(carry >= 0, carry, t_start)

    w_max = nf + _cdiv(ns, num_cores)        # static bound per core
    w = jnp.arange(w_max, dtype=jnp.int32)

    seg_rows, frag_rows, flag_rows = [], [], []
    for c in range(num_cores):
        jlo = (c * ns) // num_cores
        jhi = ((c + 1) * ns) // num_cores
        n_own = jhi - jlo
        ne = nonempty[jlo:jhi]
        tst = t_start[jlo:jhi]
        tls = t_last[jlo:jhi]
        cry = carry[jlo:jhi]

        visits = jnp.where(ne, tls - tst + 1, 1).astype(jnp.int32)
        offsets = jnp.concatenate(
            [jnp.zeros((1,), jnp.int32), jnp.cumsum(visits).astype(jnp.int32)])
        total = offsets[-1]

        jj = jnp.searchsorted(offsets, w, side='right').astype(jnp.int32) - 1
        jj = jnp.clip(jj, 0, n_own - 1)
        in_range = w < total
        ft_real = jnp.where(ne[jj], tst[jj] + (w - offsets[jj]), cry[jj])
        last_ft = jnp.where(ne[n_own - 1], tls[n_own - 1], cry[n_own - 1])

        seg = jnp.where(in_range, jlo + jj, jhi - 1)
        ft = jnp.clip(jnp.where(in_range, ft_real, last_ft), 0, nf - 1)
        flag = (in_range & ne[jj]).astype(jnp.int32)

        seg_rows.append(seg.astype(jnp.int32))
        frag_rows.append(ft.astype(jnp.int32))
        flag_rows.append(flag)
    return (jnp.concatenate(seg_rows), jnp.concatenate(frag_rows),
            jnp.concatenate(flag_rows), w_max)


def embedding_gene_pooler(embedding, fragment_cellxgene_ix, cell_n, gene_n,
                          reduce='sum', num_cores=None, d_block=None,
                          compute_dtype=None):
    """Pallas equivalent of EmbeddingGenePooler.forward (sorted indices)."""
    if reduce not in ('sum', 'mean'):
        raise ValueError("reduce must be 'sum' or 'mean'")
    cell_n = int(cell_n)
    gene_n = int(gene_n)
    n_seg = cell_n * gene_n

    if compute_dtype is not None and embedding.dtype != compute_dtype:
        # Optional bf16 fast path (mainly v5e): native MXU rate + half the
        # embedding HBM reads; in-kernel accumulation stays f32.
        embedding = embedding.astype(compute_dtype)

    n_f, d = embedding.shape
    out_dtype = embedding.dtype
    if n_f == 0:
        return jnp.zeros((cell_n, gene_n, d), out_dtype)

    tf = 128 if n_f <= 128 else 256              # fragment (contraction) tile
    ts = min(256, _round_up(n_seg, 8))           # segment (output-row) tile
    nf = _cdiv(n_f, tf)
    ns = _cdiv(n_seg, ts)

    # D is never padded (full-dim blocks are legal); it is only tiled when a
    # full-width slab would not fit the VMEM budget (guards v7x's 64 MiB).
    emb_bytes = jnp.dtype(embedding.dtype).itemsize
    if d_block is None:
        per_col = 2 * tf * emb_bytes + ts * (2 * emb_bytes + 4)
        budget = 20 * 1024 * 1024                # under default scoped VMEM limit
        if d <= 128 or per_col * d <= budget:
            d_block = d
        else:
            d_block = max(128, (budget // per_col) // 128 * 128)
    d_block = min(int(d_block), d)
    if d_block < d and d_block % 128 != 0:
        raise ValueError("d_block must be a multiple of 128 when tiling D")
    nd = _cdiv(d, d_block)

    if num_cores is None:
        num_cores = _tensorcores_per_chip()
    num_cores = max(1, min(int(num_cores), ns))

    idx = fragment_cellxgene_ix.astype(jnp.int32)
    n_f_pad = nf * tf
    # Only the tiny index vector is padded; the embedding is read as-is.
    idx_pad = jnp.full((1, n_f_pad), -1, jnp.int32).at[0, :n_f].set(idx)

    seg_sched, frag_sched, flag_sched, w_max = _build_worklist(
        idx, ns, nf, ts, tf, num_cores)

    apply_scale = reduce == 'mean'
    inputs = [seg_sched, frag_sched, flag_sched, idx_pad, embedding]
    in_specs = [
        # fragment indices of the scheduled fragment tile
        pl.BlockSpec((1, tf),
                     lambda c, dd, w, st, ft, fl: (0, ft[c * w_max + w])),
        # embedding rows of the scheduled fragment tile (D slice dd)
        pl.BlockSpec((tf, d_block),
                     lambda c, dd, w, st, ft, fl: (ft[c * w_max + w], dd)),
    ]
    if apply_scale:
        # Per-segment reciprocal counts, multiplied in-kernel on the final
        # visit of each segment tile (empty segments -> 0).
        b = jnp.searchsorted(idx, jnp.arange(n_seg + 1, dtype=jnp.int32),
                             side='left')
        cnt = (b[1:] - b[:-1]).astype(jnp.float32)
        inv = jnp.where(cnt > 0, 1.0 / jnp.maximum(cnt, 1.0), 0.0)
        inputs.append(inv.reshape(n_seg, 1))
        in_specs.append(
            pl.BlockSpec((ts, 1),
                         lambda c, dd, w, st, ft, fl: (st[c * w_max + w], 0)))

    kernel = functools.partial(_pool_kernel, ts=ts, tf=tf, n_f=n_f,
                               w_max=w_max, apply_scale=apply_scale)

    out = pl.pallas_call(
        kernel,
        # Output is exactly (n_seg, d): each core writes only its owned
        # segment tiles (disjoint), partial edge blocks are masked on store,
        # and the wrapper reshape below is zero-copy.
        out_shape=jax.ShapeDtypeStruct((n_seg, d), out_dtype),
        grid_spec=pltpu.PrefetchScalarGridSpec(
            num_scalar_prefetch=3,
            grid=(num_cores, nd, w_max),
            in_specs=in_specs,
            out_specs=pl.BlockSpec(
                (ts, d_block),
                lambda c, dd, w, st, ft, fl: (st[c * w_max + w], dd)),
            scratch_shapes=[pltpu.VMEM((ts, d_block), jnp.float32)],
        ),
        compiler_params=pltpu.CompilerParams(
            dimension_semantics=("parallel", "arbitrary", "arbitrary")),
    )(*inputs)

    return out.reshape(cell_n, gene_n, d)


if __name__ == "__main__":
    key = jax.random.PRNGKey(0)

    def reference(embedding, idx, n_seg, reduce):
        ssum = jax.ops.segment_sum(embedding, idx, num_segments=n_seg)
        if reduce == 'sum':
            return ssum
        cnt = jax.ops.segment_sum(
            jnp.ones((embedding.shape[0],), embedding.dtype), idx,
            num_segments=n_seg)
        return jnp.where(cnt[:, None] > 0,
                         ssum / jnp.maximum(cnt[:, None], 1.0), 0.0)

    configs = [
        # cell_n, gene_n, n_fragments, n_embedding_dims, idx_hi, d_block
        (2, 4, 20, 32, 8, None),        # tiny: single segment / fragment tile
        (20, 40, 3000, 32, 700, None),  # multi-tile, straddles, empty tail tiles
        (4, 8, 300, 200, 32, 128),      # ragged D + forced D tiling path
    ]
    for cfg_i, (cell_n, gene_n, n_fragments, d, idx_hi, dblk) in enumerate(configs):
        key, k_emb, k_idx = jax.random.split(key, 3)
        n_seg = cell_n * gene_n
        embedding = jax.random.normal(k_emb, (n_fragments, d),
                                      dtype=jnp.float32)
        # segment_*_coo expects sorted indices
        frag_ix = jnp.sort(jax.random.randint(k_idx, (n_fragments,), 0, idx_hi,
                                              dtype=jnp.int32))
        for reduce in ('sum', 'mean'):
            ref = reference(embedding, frag_ix, n_seg, reduce)
            ref = ref.reshape(cell_n, gene_n, d)
            for nc in (None, 1, 2):      # also exercise the 2-core schedule
                out = embedding_gene_pooler(embedding, frag_ix, cell_n, gene_n,
                                            reduce=reduce, num_cores=nc,
                                            d_block=dblk)
                out = jax.block_until_ready(out)
                assert out.shape == (cell_n, gene_n, d)
                assert jnp.allclose(out, ref, atol=1e-4, rtol=1e-4), (
                    cfg_i, reduce, nc,
                    float(jnp.max(jnp.abs(out - ref))))
    print("KERNEL_OK")
</pallas_src>

<mosaic_0001>
module attributes {stable_mosaic.version = 11 : i64} {
  func.func @_pool_kernel(%arg0: i32, %arg1: i32, %arg2: i32, %arg3: memref<2xi32, #tpu.memory_space<smem>>, %arg4: memref<2xi32, #tpu.memory_space<smem>>, %arg5: memref<2xi32, #tpu.memory_space<smem>>, %arg6: memref<1x128xi32, #tpu.memory_space<vmem>>, %arg7: memref<128x32xf32, #tpu.memory_space<vmem>>, %arg8: memref<8x32xf32, #tpu.memory_space<vmem>>, %arg9: memref<8x32xf32, #tpu.memory_space<vmem>>) attributes {dimension_semantics = [#tpu.dimension_semantics<parallel>, #tpu.dimension_semantics<arbitrary>, #tpu.dimension_semantics<arbitrary>], iteration_bounds = array<i64: 1, 1, 2>, scalar_prefetch = 3 : i64, scratch_operands = 1 : i64, tpu.core_type = #tpu.core_type<tc>, window_params = [{transform_indices = @transform_0, window_bounds = array<i64: 1, 128>}, {transform_indices = @transform_1, window_bounds = array<i64: 128, 32>}, {transform_indices = @transform_2, window_bounds = array<i64: 8, 32>}]} {
    %c2_i32 = arith.constant 2 : i32
    %0 = arith.muli %arg0, %c2_i32 : i32
    %1 = arith.addi %0, %arg2 : i32
    %2 = arith.index_cast %1 : i32 to index
    %3 = memref.load %arg3[%2] : memref<2xi32, #tpu.memory_space<smem>>
    %c1_i32 = arith.constant 1 : i32
    %4 = arith.subi %arg2, %c1_i32 : i32
    %c0_i32 = arith.constant 0 : i32
    %5 = arith.maxsi %4, %c0_i32 : i32
    %6 = arith.addi %0, %5 : i32
    %7 = arith.index_cast %6 : i32 to index
    %8 = memref.load %arg3[%7] : memref<2xi32, #tpu.memory_space<smem>>
    %c1_i32_0 = arith.constant 1 : i32
    %9 = arith.addi %arg2, %c1_i32_0 : i32
    %c1_i32_1 = arith.constant 1 : i32
    %10 = arith.minsi %9, %c1_i32_1 : i32
    %11 = arith.addi %0, %10 : i32
    %12 = arith.index_cast %11 : i32 to index
    %13 = memref.load %arg3[%12] : memref<2xi32, #tpu.memory_space<smem>>
    %c0_i32_2 = arith.constant 0 : i32
    %14 = arith.cmpi eq, %arg2, %c0_i32_2 : i32
    %15 = arith.cmpi ne, %3, %8 : i32
    %16 = arith.ori %14, %15 : i1
    %c1_i32_3 = arith.constant 1 : i32
    %17 = arith.cmpi eq, %arg2, %c1_i32_3 : i32
    %18 = arith.cmpi ne, %3, %13 : i32
    %19 = arith.ori %17, %18 : i1
    %20 = arith.addi %0, %arg2 : i32
    %21 = arith.index_cast %20 : i32 to index
    %22 = memref.load %arg5[%21] : memref<2xi32, #tpu.memory_space<smem>>
    %c0_i32_4 = arith.constant 0 : i32
    %23 = arith.cmpi ne, %22, %c0_i32_4 : i32
    %24 = arith.extui %23 : i1 to i32
    %c0_i32_5 = arith.constant 0 : i32
    %25 = arith.cmpi ne, %24, %c0_i32_5 : i32
    scf.if %25 {
      %c0 = arith.constant 0 : index
      %c0_8 = arith.constant 0 : index
      %32 = vector.load %arg7[%c0, %c0_8] : memref<128x32xf32, #tpu.memory_space<vmem>>, vector<128x32xf32>
      %33 = arith.addi %0, %arg2 : i32
      %34 = arith.index_cast %33 : i32 to index
      %35 = memref.load %arg4[%34] : memref<2xi32, #tpu.memory_space<smem>>
      %c128_i32 = arith.constant 128 : i32
      %36 = arith.muli %35, %c128_i32 : i32
      %c20_i32 = arith.constant 20 : i32
      %37 = arith.subi %c20_i32, %36 : i32
      %c128_i32_9 = arith.constant 128 : i32
      %38 = arith.minsi %37, %c128_i32_9 : i32
      %39 = tpu.iota {dimensions = array<i32: 0>} : vector<128x1xi32>
      %40 = vector.broadcast %38 : i32 to vector<128x1xi32>
      %41 = arith.cmpi slt, %39, %40 : vector<128x1xi32>
      %c0_i32_10 = arith.constant 0 : i32
      %42 = arith.sitofp %c0_i32_10 : i32 to f32
      %43 = vector.shape_cast %41 : vector<128x1xi1> to vector<128x1xi1>
      %44 = vector.broadcast %43 : vector<128x1xi1> to vector<128x32xi1>
      %45 = vector.broadcast %42 : f32 to vector<128x32xf32>
      %46 = arith.select %44, %32, %45 : vector<128x32xi1>, vector<128x32xf32>
      %c0_11 = arith.constant 0 : index
      %c0_12 = arith.constant 0 : index
      %47 = vector.load %arg6[%c0_11, %c0_12] : memref<1x128xi32, #tpu.memory_space<vmem>>, vector<1x128xi32>
      %c8_i32 = arith.constant 8 : i32
      %48 = arith.muli %3, %c8_i32 : i32
      %49 = vector.broadcast %48 : i32 to vector<1x128xi32>
      %50 = arith.subi %47, %49 : vector<1x128xi32>
      %51 = tpu.iota {dimensions = array<i32: 0>} : vector<8x1xi32>
      %52 = vector.broadcast %51 : vector<8x1xi32> to vector<8x128xi32>
      %53 = vector.broadcast %50 : vector<1x128xi32> to vector<8x128xi32>
      %54 = arith.cmpi eq, %52, %53 : vector<8x128xi32>
      %55 = arith.extui %54 : vector<8x128xi1> to vector<8x128xi32>
      %56 = arith.sitofp %55 : vector<8x128xi32> to vector<8x128xf32>
      %cst = arith.constant dense<0.000000e+00> : vector<8x32xf32>
      %57 = tpu.matmul %56, %46, %cst {dimension_numbers = #tpu.dot_dimension_numbers<[1], [0], [0], [1], [0, 0, 1, 1], [], []>} : vector<8x128xf32>, vector<128x32xf32>, vector<8x32xf32> -> vector<8x32xf32>
      %58 = arith.extui %16 : i1 to i32
      %c0_i32_13 = arith.constant 0 : i32
      %59 = arith.cmpi ne, %58, %c0_i32_13 : i32
      scf.if %59 {
        %c0_16 = arith.constant 0 : index
        %c0_17 = arith.constant 0 : index
        %63 = vector.load %arg9[%c0_16, %c0_17] : memref<8x32xf32, #tpu.memory_space<vmem>>, vector<8x32xf32>
        tpu.vector_store %arg9[%c0_16, %c0_17], %57 {strides = array<i32>} : memref<8x32xf32, #tpu.memory_space<vmem>>, vector<8x32xf32>,
      } else {
      }
      %true_14 = arith.constant true
      %60 = arith.xori %16, %true_14 : i1
      %61 = arith.extui %60 : i1 to i32
      %c0_i32_15 = arith.constant 0 : i32
      %62 = arith.cmpi ne, %61, %c0_i32_15 : i32
      scf.if %62 {
        %c0_16 = arith.constant 0 : index
        %c0_17 = arith.constant 0 : index
        %63 = vector.load %arg9[%c0_16, %c0_17] : memref<8x32xf32, #tpu.memory_space<vmem>>, vector<8x32xf32>
        %64 = arith.addf %63, %57 : vector<8x32xf32>
        %c0_18 = arith.constant 0 : index
        %c0_19 = arith.constant 0 : index
        %65 = vector.load %arg9[%c0_18, %c0_19] : memref<8x32xf32, #tpu.memory_space<vmem>>, vector<8x32xf32>
        tpu.vector_store %arg9[%c0_18, %c0_19], %64 {strides = array<i32>} : memref<8x32xf32, #tpu.memory_space<vmem>>, vector<8x32xf32>,
      } else {
      }
    } else {
    }
    %true = arith.constant true
    %26 = arith.xori %23, %true : i1
    %27 = arith.andi %16, %26 : i1
    %28 = arith.extui %27 : i1 to i32
    %c0_i32_6 = arith.constant 0 : i32
    %29 = arith.cmpi ne, %28, %c0_i32_6 : i32
    scf.if %29 {
      %cst = arith.constant 0.000000e+00 : f32
      %32 = vector.broadcast %cst : f32 to vector<8x32xf32>
      %c0 = arith.constant 0 : index
      %c0_8 = arith.constant 0 : index
      %33 = vector.load %arg9[%c0, %c0_8] : memref<8x32xf32, #tpu.memory_space<vmem>>, vector<8x32xf32>
      tpu.vector_store %arg9[%c0, %c0_8], %32 {strides = array<i32>} : memref<8x32xf32, #tpu.memory_space<vmem>>, vector<8x32xf32>,
    } else {
    }
    %30 = arith.extui %19 : i1 to i32
    %c0_i32_7 = arith.constant 0 : i32
    %31 = arith.cmpi ne, %30, %c0_i32_7 : i32
    scf.if %31 {
      %c0 = arith.constant 0 : index
      %c0_8 = arith.constant 0 : index
      %32 = vector.load %arg9[%c0, %c0_8] : memref<8x32xf32, #tpu.memory_space<vmem>>, vector<8x32xf32>
      %c0_9 = arith.constant 0 : index
      %c0_10 = arith.constant 0 : index
      %33 = vector.load %arg8[%c0_9, %c0_10] : memref<8x32xf32, #tpu.memory_space<vmem>>, vector<8x32xf32>
      tpu.vector_store %arg8[%c0_9, %c0_10], %32 {strides = array<i32>} : memref<8x32xf32, #tpu.memory_space<vmem>>, vector<8x32xf32>,
    } else {
    }
    return
  }
  func.func @transform_0(%arg0: i32, %arg1: i32, %arg2: i32, %arg3: memref<2xi32, #tpu.memory_space<smem>>, %arg4: memref<2xi32, #tpu.memory_space<smem>>, %arg5: memref<2xi32, #tpu.memory_space<smem>>) -> (i32, i32) {
    %c2_i32 = arith.constant 2 : i32
    %0 = arith.muli %arg0, %c2_i32 : i32
    %1 = arith.addi %0, %arg2 : i32
    %2 = arith.index_cast %1 : i32 to index
    %3 = memref.load %arg4[%2] : memref<2xi32, #tpu.memory_space<smem>>
    %c0_i32 = arith.constant 0 : i32
    %c0_i32_0 = arith.constant 0 : i32
    return %c0_i32, %3 : i32, i32
  }
  func.func @transform_1(%arg0: i32, %arg1: i32, %arg2: i32, %arg3: memref<2xi32, #tpu.memory_space<smem>>, %arg4: memref<2xi32, #tpu.memory_space<smem>>, %arg5: memref<2xi32, #tpu.memory_space<smem>>) -> (i32, i32) {
    %c2_i32 = arith.constant 2 : i32
    %0 = arith.muli %arg0, %c2_i32 : i32
    %1 = arith.addi %0, %arg2 : i32
    %2 = arith.index_cast %1 : i32 to index
    %3 = memref.load %arg4[%2] : memref<2xi32, #tpu.memory_space<smem>>
    %c0_i32 = arith.constant 0 : i32
    return %3, %arg1 : i32, i32
  }
  func.func @transform_2(%arg0: i32, %arg1: i32, %arg2: i32, %arg3: memref<2xi32, #tpu.memory_space<smem>>, %arg4: memref<2xi32, #tpu.memory_space<smem>>, %arg5: memref<2xi32, #tpu.memory_space<smem>>) -> (i32, i32) {
    %c2_i32 = arith.constant 2 : i32
    %0 = arith.muli %arg0, %c2_i32 : i32
    %1 = arith.addi %0, %arg2 : i32
    %2 = arith.index_cast %1 : i32 to index
    %3 = memref.load %arg3[%2] : memref<2xi32, #tpu.memory_space<smem>>
    %c0_i32 = arith.constant 0 : i32
    return %3, %arg1 : i32, i32
  }
}

</mosaic_0001>

<bundles_post_ra>
// kernel: tpu_custom_call.1
= control target key start
LH: loop header
LB: loop body
LE: loop exit
PB: predicated region body
PF: predicated region fallthrough
CT: control target
= control target key end

     0   :  { %s1375_s0 = inlined_call_operand.hbm [shape: s32[2], index: 0, kind: input, shape index: {}]   ;;  %s1376_s3 = inlined_call_operand.vmem [shape: s32[1,128], index: 3, kind: input, shape index: {}]   ;;  %s1377_s4 = inlined_call_operand.hbm [shape: f32[20,32], index: 4, kind: input, shape index: {}]   ;;  %s1378_s5 = inlined_call_operand.hbm [shape: f32[8,32], index: 5, kind: output, shape index: {}]   ;;  %s1379_s1 = inlined_call_operand.vmem [shape: s32[2], index: 1, kind: input, shape index: {}]   ;;  %s1380_s2 = inlined_call_operand.vmem [shape: s32[2], index: 2, kind: input, shape index: {}]  }
   0x1   :  { %s825_s20 = scalar_lea.hbm %s1375_s0, 16 }
   0x2   :  { %p826_p0 = scmp.ne.s32.totalorder %s1375_s0, %s825_s20  ;;  %p829_p1 = scmp.lt.u32.totalorder %s825_s20, %s1375_s0 }
   0x4   :  { %p831_p2 = pnand %p829_p1, %p826_p0 }
   0x6   :  { %834 = shalt.err (!%p831_p2)  }
   0x7   :  { %s997_s25 = smov [#allocation4]   ;;  %s12_s30 = sshll.u32 %s1379_s1, 4  ;;  %s13_s30 = int_to_ptr.vmem [resolvable:$true] %s12_s30 }
   0x8   :  { %11 = dma.hbm_to_smem %s1375_s0, 16, %s997_s25, [#allocation3] }
   0x9   :  { %s16_s8 = sshll.u32 %s1380_s2, 4  ;;  %s835_s9 = scalar_lea.vmem %s13_s30, 16  ;;  %s17_s8 = int_to_ptr.vmem [resolvable:$true] %s16_s8 }
   0xa   :  { %p836_p3 = scmp.ne.s32.totalorder %s13_s30, %s835_s9  ;;  %p840_p4 = scmp.lt.s32.totalorder %s13_s30, %s13_s30 }
   0xb   :  { %p841_p5 = scmp.lt.s32.totalorder %s835_s9, %s835_s9 }
   0xd   :  { %p842_p6 = por %p841_p5, %p840_p4 }
   0xf   :  { %p843_p7 = pnand %p842_p6, %p836_p3 }
  0x11   :  { %846 = shalt.err (!%p843_p7)  }
  0x12   :  { %s998_s10 = smov [#allocation5]   ;;  %s847_s0 = scalar_lea.vmem %s17_s8, 16 }
  0x13   :  { %15 = dma.vmem_to_smem %s13_s30, 16, %s998_s10, [#allocation3] }
  0x14   :  { %p848_p8 = scmp.ne.s32.totalorder %s17_s8, %s847_s0  ;;  %p852_p9 = scmp.lt.s32.totalorder %s17_s8, %s17_s8 }
  0x15   :  { %p853_p10 = scmp.lt.s32.totalorder %s847_s0, %s847_s0 }
  0x17   :  { %p854_p11 = por %p853_p10, %p852_p9 }
  0x19   :  { %p855_p12 = pnand %p854_p11, %p848_p8 }
  0x1b   :  { %858 = shalt.err (!%p855_p12)  }
  0x1c   :  { %s999_s1 = smov [#allocation6]  }
  0x1d   :  { %19 = dma.vmem_to_smem %s17_s8, 16, %s999_s1, [#allocation3] }
  0x1e   :  { %951 = dma.done.wait [#allocation3], 48 }
  0x1f   :  { %952 = vsyncadd [#allocation3], 4294967248 }
  0x20   :  { %21 = sfence }
  0x21   :  { %22 = vsyncpa [#allocation8], 0 }
  0x22   :  { %24 = vsyncpa [#allocation8 + $0x1], 0 }
  0x23   :  { %25 = vsyncpa [#allocation9], 0 }
  0x24   :  { %27 = vsyncpa [#allocation9 + $0x1], 0  ;;  %s1057_s2 = smov 0   ;;  %s1059_s11 = smov 0  }
  0x25   :  { %s1061_s12 = smov 0   ;;  %s1063_s13 = smov 0  }
  0x26   :  { %s1065_s14 = smov 0   ;;  %s1067_s15 = smov 0  }
  0x27   :  { %s1069_s16 = smov 0   ;;  %s1071_s17 = smov 0  }
  0x28   :  { %s1073_s18 = smov 0  }
  0x29 LB: > { %s608_s19 = sadd.s32 4294967295, %s995_s18   ;;  %s609_s20 = sadd.s32 4294967294, %s995_s18   ;;  %s995_s18 = sphi %s1073_s18, %s33_s18   ;;  %s991_s17 = sphi %s1071_s17, %s1397_s17   ;;  %s987_s16 = sphi %s1069_s16, %s1396_s16   ;;  %s983_s15 = sphi %s1067_s15, %s1395_s15   ;;  %s979_s14 = sphi %s1065_s14, %s1394_s14   ;;  %s975_s13 = sphi %s1063_s13, %s1393_s13   ;;  %s971_s12 = sphi %s1061_s12, %s1392_s12   ;;  %s967_s11 = sphi %s1059_s11, %s1391_s11   ;;  %s963_s2 = sphi %s1057_s2, %s1390_s2  }
  0x2a   : > { %s45_s21 = sadd.s32 1, %s991_s17  ;;  %s90_s22 = sld [smem:[#allocation5 + %s991_s17]] }
  0x2b   : > { %p46_p13 = scmp.ge.s32.totalorder %s45_s21, 2  ;;  %p106_p0 = scmp.ne.s32.totalorder %s983_s15, %s979_s14 }
  0x2c   : > { %p107_p1 = scmp.eq.s32.totalorder %s995_s18, 0  ;;  %p112_p3 = scmp.ne.s32.totalorder %s979_s14, %s975_s13 }
  0x2d   : > { %s1399_s21 = smov (%p46_p13, %s45_s21), 0  ;;  %p113_p4 = scmp.eq.s32.totalorder %s608_s19, 0 }
  0x2e   : > { %p1109_p2 = por %p107_p1, %p106_p0  ;;  %s93_s24 = sld [smem:[#allocation5 + %s1399_s21]] }
  0x2f   : > { %s124_s25 = sld [smem:[#allocation4 + %s991_s17]]  ;;  %s99_s27 = sadd.s32 1, %s983_s15 }
  0x30   : > { %s127_s26 = sld [smem:[#allocation4 + %s1399_s21]]  ;;  %p1118_p5 = por %p113_p4, %p112_p3 }
  0x31   : > { %p143_p6 = scmp.ne.s32.totalorder %s971_s12, %s967_s11  ;;  %p144_p7 = scmp.eq.s32.totalorder %s608_s19, 1 }
  0x32   : > { %p149_p8 = scmp.ne.s32.totalorder %s967_s11, %s963_s2  ;;  %p150_p9 = scmp.eq.s32.totalorder %s609_s20, 1 }
  0x33   : > { %s133_s29 = sadd.s32 1, %s971_s12  ;;  %p1127_p10 = por %p144_p7, %p143_p6 }
  0x34   : > { %s94_s6 = ssub.s32 %s90_s22, %s93_s24  ;;  %p1131_p11 = por %p150_p9, %p149_p8 }
  0x35   : > { %p97_p12 = scmp.eq.s32.totalorder %s94_s6, 0  ;;  %p1381_p0 = scmp.ge.s32.totalorder %s995_s18, 2 }
  0x36   : > { %s1385_s7 = scalar_select %p1131_p11, 1, 0 }
  0x37   : > { %s128_s8 = ssub.s32 %s124_s25, %s127_s26  ;;  %166 = sbr.rel (%p1381_p0) target bundleno = 98 (0x62), region = 16 }
  0x38   : > { %p131_p13 = scmp.eq.s32.totalorder %s128_s8, 0 }
  0x39   : > { %s1136_s9 = scalar_select %p97_p12, %s983_s15, %s99_s27  }
  0x3a   : > { %s1139_s10 = scalar_select %p131_p13, %s971_s12, %s133_s29  }
  0x3e   : > { %181 = sbr.rel (!%p1109_p2) target bundleno = 98 (0x62), region = 24  ;;  %s182_s0 = sand.u32 (%p1109_p2), 1, %s983_s15  }
  0x3f   : > { %s189_s1 = sld [smem:[#allocation5 + %s991_s17]] (%p1109_p2)  ;;  %s612_s13 = sshll.u32 (%p1109_p2), %s182_s0, 7 }
  0x40   : > { %s1151_s25 = scalar_lea.sflag (%p1109_p2), [#allocation8], %s182_s0  ;;  %s186_s26 = scalar_lea.vmem (%p1109_p2), [#allocation7], %s612_s13 }
  0x45   : > { %s613_s19 = sshll.u32 %s189_s1, 4 }
  0x46   : > { %s191_s20 = ssub.s32 3, %s613_s19 }
  0x47   : > { %s1148_s22 = sshll.u32 %s191_s20, 7 }
  0x48   : > { %s194_s24 = ssub.s32 2048, %s1148_s22 }
  0x49   : > { %195 = vsyncadd %s1151_s25, %s194_s24  ;;  %p615_p1 = scmp.ne.s32.totalorder %s1148_s22, 0  ;;  %s648_s23 = sshll.u32 %s189_s1, 11 }
  0x4a   : > { %s1158_s6 = scalar_lea.hbm %s1377_s4, %s648_s23  ;;  %s201_s8 = sshll.u32 %s186_s26, 4  ;;  %s1160_s8 = int_to_ptr.vmem [resolvable:$true] %s201_s8 }
  0x4b   : > { %s859_s0 = scalar_lea.hbm %s1158_s6, %s1148_s22  ;;  %s863_s1 = scalar_lea.hbm %s1377_s4, 384 }
  0x4c   : > { %p860_p2 = scmp.ne.s32.totalorder %s1158_s6, %s859_s0  ;;  %p864_p6 = scmp.lt.u32.totalorder %s1158_s6, %s1377_s4 }
  0x4d   : > { %p865_p7 = scmp.lt.u32.totalorder %s863_s1, %s859_s0  ;;  %p867_p9 = scmp.lt.u32.totalorder %s859_s0, %s1158_s6 }
  0x4e   : > { %p861_p3 = pnand %p860_p2, %p615_p1 }
  0x4f   : > { %p866_p8 = por %p865_p7, %p864_p6 }
  0x50   : > { %p862_p4 = pneg %p861_p3 }
  0x51   : > { %p868_p12 = por %p867_p9, %p866_p8 }
  0x53   : > { %p869_p13 = pnand %p868_p12, %p862_p4 }
  0x55   : > { %872 = shalt.err (!%p869_p13)
}
  0x56   : > { %s873_s26 = scalar_lea.vmem %s1160_s8, %s1148_s22  ;;  %s1000_s23 = smov [#allocation7]  }
  0x57   : > { %p874_p2 = scmp.ne.s32.totalorder %s1160_s8, %s873_s26  ;;  %s877_s27 = sshll.u32 %s1000_s23, 4  ;;  %s878_s27 = int_to_ptr.vmem [resolvable:$false] %s877_s27 }
  0x58   : > { %s879_s29 = scalar_lea.vmem %s878_s27, 4096  ;;  %p880_p11 = scmp.lt.s32.totalorder %s1160_s8, %s878_s27 }
  0x59   : > { %p875_p3 = pnand %p874_p2, %p615_p1  ;;  %p881_p6 = scmp.lt.s32.totalorder %s879_s29, %s873_s26 }
  0x5b   : > { %p876_p0 = pneg %p875_p3  ;;  %p882_p7 = por %p881_p6, %p880_p11 }
  0x5d   : > { %p883_p8 = pnand %p882_p7, %p876_p0 }
  0x5f   : > { %886 = shalt.err (!%p883_p8)
}
  0x60   : > { %s1001_s0 = smov 128   ;;  %s1002_s13 = smov 8  }
  0x61   : > { %207 = dma.hbm_to_vmem [thread:$0]  (%p615_p1), %s1158_s6, %s1148_s22, %s1160_s8, %s1151_s25, %s1001_s0, %s1001_s0, %s1002_s13  }
  0x62 PF: > { %p619_p4 = scmp.ge.s32.totalorder %s995_s18, 1  ;;  %p209_p9 = scmp.lt.s32.totalorder %s995_s18, 3 }
  0x64   : > { %p210_p12 = pnand %p619_p4, %p209_p9 }
  0x65   : > { %s215_s19 = sand.u32 (!%p210_p12), 1, %s979_s14  }
  0x66   : > { %213 = sbr.rel (%p210_p12) target bundleno = 432 (0x1b0), region = 28  ;;  %s620_s1 = sshll.u32 (!%p210_p12), %s215_s19, 7 }
  0x67   : > { %s216_s20 = scalar_lea.sflag (!%p210_p12), [#allocation8], %s215_s19  ;;  %s1190_s24 = scalar_lea.vmem (!%p210_p12), [#allocation7], %s620_s1 }
  0x6d   : > { %954 = dma.done.wait (%p1118_p5), %s216_s20, 2048  }
  0x6e   : > { %956 = vsyncadd (%p1118_p5), %s216_s20, 4294965248  ;;  %s622_s22 = sadd.s32 4294967295, %s987_s16  ;;  %s272_s25 = sadd.s32 1, %s987_s16 }
  0x6f   : > { %s248_s6 = sld [smem:[#allocation5 + %s987_s16]]  ;;  %p268_p11 = scmp.gt.s32.totalorder %s622_s22, 0 }
  0x70   : > { %p273_p0 = scmp.lt.s32.totalorder %s272_s25, 1  ;;  %s1200_s8 = sld [smem:[#allocation4 + %s987_s16]] }
  0x71   : > { %s1401_s22 = smov (!%p268_p11, %s622_s22), 0  ;;  %s1203_s26 = sld [smem:[#allocation6 + %s987_s16]] }
  0x72   : > { %s1403_s25 = smov (!%p273_p0, %s272_s25), 1  ;;  %s271_s28 = sld [smem:[#allocation4 + %s1401_s22]] }
  0x73   : > { %s276_s23 = sld [smem:[#allocation4 + %s1403_s25]]  ;;  %p277_p1 = scmp.eq.s32.totalorder %s987_s16, 0 }
  0x74   : > { %s243_s27 = sand.u32 1, %s967_s11   ;;  %p280_p13 = scmp.eq.s32.totalorder %s987_s16, 1 }
  0x75   : > { %p249_p5 = scmp.lt.s32.totalorder %s248_s6, 0  ;;  %s1212_s29 = sshll.u32 %s243_s27, 3 }
  0x76   : > { %s245_s22 = scalar_lea.vmem [#allocation10], %s1212_s29 }
  0x77   : > { %s1405_s6 = smov (!%p249_p5, %s248_s6), 0  ;;  %p623_p8 = scmp.eq.s32.totalorder %s1203_s26, 0 }
  0x78   : > { %s251_s19 = scalar_lea.vmem %s1376_s3, %s1405_s6  ;;  %p278_p2 = scmp.ne.s32.totalorder %s1200_s8, %s271_s28  ;;  %v1003_v0 = vmov (!%p623_p8), 0.0|0.0   ;;  %v309_v1 = vlaneseq (!%p623_p8)  ;;  %vm1004_vm0 = vmmov (!%p623_p8), 0   ;;  %v1005_v2 = vmov (!%p623_p8), 0.0   ;;  %v288_v4 = vld [vmem:[%s1190_s24] sm:$0xff] (!%p623_p8)  ;;  %v289_v5 = vld [vmem:[%s1190_s24 + $0x8] sm:$0xff] (!%p623_p8)  ;;  %v290_v11 = vld [vmem:[%s1190_s24 + $0x10] sm:$0xff] (!%p623_p8) }
  0x79   : > { %p281_p3 = scmp.ne.s32.totalorder %s1200_s8, %s276_s23  ;;  %287 = sbr.rel (%p623_p8) target bundleno = 390 (0x186), region = 36  ;;  %701 = vmatprep.subr.bf16.mxu0 (!%p623_p8), %v1003_v0  ;;  %698 = vmatprep.mubr.msk.f32.mxu0 (!%p623_p8), %vm1004_vm0, %v1005_v2  ;;  %v702_v9 = vpack.c.bf16 (!%p623_p8), %v289_v5, %v288_v4  ;;  %v291_v12 = vld [vmem:[%s1190_s24 + $0x18] sm:$0xff] (!%p623_p8)  ;;  %v292_v16 = vld [vmem:[%s1190_s24 + $0x20] sm:$0xff] (!%p623_p8)  ;;  %v293_v17 = vld [vmem:[%s1190_s24 + $0x28] sm:$0xff] (!%p623_p8)  ;;  %v1006_v49 = vmov (!%p623_p8), 1.0  }
  0x7a   : > { %p1220_p6 = por %p278_p2, %p277_p1  ;;  %s304_s25 = sld [smem:[#allocation5 + %s987_s16]] (!%p623_p8)  ;;  %v1234_v3 = vshrl.u32 (!%p623_p8), %v309_v1, 7  ;;  %v706_v15 = vpack.c.bf16 (!%p623_p8), %v291_v12, %v290_v11  ;;  %v710_v20 = vpack.c.bf16 (!%p623_p8), %v293_v17, %v292_v16  ;;  %v294_v21 = vld [vmem:[%s1190_s24 + $0x30] sm:$0xff] (!%p623_p8)  ;;  %v295_v22 = vld [vmem:[%s1190_s24 + $0x38] sm:$0xff] (!%p623_p8)  ;;  %v296_v26 = vld [vmem:[%s1190_s24 + $0x40] sm:$0xff] (!%p623_p8) }
  0x7b   : > { %p1224_p7 = por %p281_p3, %p280_p13  ;;  %v714_v25 = vpack.c.bf16 (!%p623_p8), %v295_v22, %v294_v21  ;;  %v297_v27 = vld [vmem:[%s1190_s24 + $0x48] sm:$0xff] (!%p623_p8)  ;;  %v298_v31 = vld [vmem:[%s1190_s24 + $0x50] sm:$0xff] (!%p623_p8)  ;;  %v299_v32 = vld [vmem:[%s1190_s24 + $0x58] sm:$0xff] (!%p623_p8)  ;;  %s625_s0 = sshll.u32 (!%p623_p8), %s1200_s8, 3 }
  0x7c   : > { %v311_v6 = vadd.s32 (!%p623_p8), 8, %v1234_v3  ;;  %v312_v7 = vadd.s32 (!%p623_p8), 16, %v1234_v3  ;;  %v313_v8 = vadd.s32 (!%p623_p8), 24, %v1234_v3  ;;  %v314_v13 = vadd.s32 (!%p623_p8), 32, %v1234_v3  ;;  %v300_v36 = vld [vmem:[%s1190_s24 + $0x60] sm:$0xff] (!%p623_p8)  ;;  %v301_v37 = vld [vmem:[%s1190_s24 + $0x68] sm:$0xff] (!%p623_p8) }
  0x7d   : > { %v315_v14 = vadd.s32 (!%p623_p8), 40, %v1234_v3  ;;  %v316_v18 = vadd.s32 (!%p623_p8), 48, %v1234_v3  ;;  %v317_v19 = vadd.s32 (!%p623_p8), 56, %v1234_v3  ;;  %v318_v23 = vadd.s32 (!%p623_p8), 64, %v1234_v3  ;;  %v391_v38 = vld [vmem:[%s251_s19] sm:$0x1] (!%p623_p8) }
  0x7e   : > { %v319_v24 = vadd.s32 (!%p623_p8), 72, %v1234_v3  ;;  %v320_v28 = vadd.s32 (!%p623_p8), 80, %v1234_v3  ;;  %v321_v29 = vadd.s32 (!%p623_p8), 88, %v1234_v3  ;;  %v718_v30 = vpack.c.bf16 (!%p623_p8), %v297_v27, %v296_v26  ;;  %v302_v45 = vld [vmem:[%s1190_s24 + $0x70] sm:$0xff] (!%p623_p8)  ;;  %v303_v46 = vld [vmem:[%s1190_s24 + $0x78] sm:$0xff] (!%p623_p8) }
  0x7f   : > { %v322_v33 = vadd.s32 (!%p623_p8), 96, %v1234_v3  ;;  %v323_v34 = vadd.s32 (!%p623_p8), 104, %v1234_v3  ;;  %v722_v35 = vpack.c.bf16 (!%p623_p8), %v299_v32, %v298_v31  ;;  %v393_v39 = vstv (!%p623_p8), %s625_s0 }
  0x80   : > { %s624_s28 = sshll.u32 %s304_s25, 7  ;;  %v324_v40 = vadd.s32 112, %v1234_v3  ;;  %v325_v41 = vadd.s32 120, %v1234_v3  ;;  %v726_v42 = vpack.c.bf16 %v301_v37, %v300_v36  ;;  %v394_v43 = vsub.s32 %v391_v38, %v393_v39 }
  0x81   : > { %s306_s23 = ssub.s32 20, %s624_s28  ;;  %v397_v44 = vsub.s32 0, %v1234_v3  ;;  %v730_v47 = vpack.c.bf16 %v303_v46, %v302_v45 }
  0x82   : > { %p307_p4 = scmp.lt.s32.totalorder %s306_s23, 128 }
  0x83   : > { %v398_v48 = vrot.slane %v394_v43, %v397_v44 }
  0x84   : > { %s1407_s23 = smov (!%p307_p4, %s306_s23), 128 }
  0x85   : > { %v1241_v10 = vstv %s1407_s23 }
  0x86   : > { %vm327_vm1 = vcmp.lt.s32.totalorder %v1234_v3, %v1241_v10  ;;  %vm328_vm2 = vcmp.lt.s32.totalorder %v311_v6, %v1241_v10  ;;  %vm329_vm3 = vcmp.lt.s32.totalorder %v312_v7, %v1241_v10  ;;  %vm330_vm4 = vcmp.lt.s32.totalorder %v313_v8, %v1241_v10 }
  0x87   : > { %vm703_vm5 = vmpackc.low %vm328_vm2, %vm327_vm1  ;;  %vm331_vm7 = vcmp.lt.s32.totalorder %v314_v13, %v1241_v10  ;;  %vm332_vm8 = vcmp.lt.s32.totalorder %v315_v14, %v1241_v10  ;;  %vm333_vm10 = vcmp.lt.s32.totalorder %v316_v18, %v1241_v10  ;;  %vm334_vm11 = vcmp.lt.s32.totalorder %v317_v19, %v1241_v10 }
  0x88   : > { %704 = vmatpush3.bf16.msk.msra.mxu0 %vm703_vm5, %v702_v9  ;;  %vm707_vm6 = vmpackc.low %vm330_vm4, %vm329_vm3  ;;  %vm335_vm13 = vcmp.lt.s32.totalorder %v318_v23, %v1241_v10  ;;  %vm336_vm14 = vcmp.lt.s32.totalorder %v319_v24, %v1241_v10  ;;  %vm337_vm0 = vcmp.lt.s32.totalorder %v320_v28, %v1241_v10  ;;  %vm338_vm1 = vcmp.lt.s32.totalorder %v321_v29, %v1241_v10 }
  0x89   : > { %705 = vmatprep.subr.bf16.mxu0 %v1003_v0  ;;  %vm711_vm9 = vmpackc.low %vm332_vm8, %vm331_vm7  ;;  %vm339_vm3 = vcmp.lt.s32.totalorder %v322_v33, %v1241_v10  ;;  %vm340_vm4 = vcmp.lt.s32.totalorder %v323_v34, %v1241_v10  ;;  %vm342_vm7 = vcmp.lt.s32.totalorder %v325_v41, %v1241_v10 }
  0x8a   : > { %vm715_vm12 = vmpackc.low %vm334_vm11, %vm333_vm10  ;;  %vm475_vm10 = vcmask (%p1220_p6), 261120  }
  0x8b   : > { %vm719_vm15 = vmpackc.low %vm336_vm14, %vm335_vm13 }
  0x8c   : > { %708 = vmatpush3.bf16.msk.msra.mxu0 %vm707_vm6, %v706_v15  ;;  %vm723_vm2 = vmpackc.low %vm338_vm1, %vm337_vm0  ;;  %vm341_vm6 = vcmp.lt.s32.totalorder %v324_v40, %v1241_v10 }
  0x8d   : > { %709 = vmatprep.subr.bf16.mxu0 %v1003_v0  ;;  %vm727_vm5 = vmpackc.low %vm340_vm4, %vm339_vm3 }
  0x8e   : > { %vm731_vm8 = vmpackc.low %vm342_vm7, %vm341_vm6 }
  0x90   : > { %712 = vmatpush3.bf16.msk.msra.mxu0 %vm711_vm9, %v710_v20  ;;  %vm399_vm9 = vcmp.eq.s32.totalorder %v1234_v3, %v398_v48 }
  0x91   : > { %713 = vmatprep.subr.bf16.mxu0 %v1003_v0 }
  0x94   : > { %716 = vmatpush3.bf16.msk.msra.mxu0 %vm715_vm12, %v714_v25 }
  0x95   : > { %717 = vmatprep.subr.bf16.mxu0 %v1003_v0 }
  0x98   : > { %720 = vmatpush3.bf16.msk.msra.mxu0 %vm719_vm15, %v718_v30 }
  0x99   : > { %721 = vmatprep.subr.bf16.mxu0 %v1003_v0 }
  0x9c   : > { %724 = vmatpush3.bf16.msk.msra.mxu0 %vm723_vm2, %v722_v35 }
  0x9d   : > { %725 = vmatprep.subr.bf16.mxu0 %v1003_v0 }
  0xa0   : > { %728 = vmatpush3.bf16.msk.msra.mxu0 %vm727_vm5, %v726_v42 }
  0xa1   : > { %729 = vmatprep.subr.bf16.mxu0 %v1003_v0 }
  0xa4   : > { %732 = vmatpush3.bf16.msk.msra.mxu0 %vm731_vm8, %v730_v47 }
  0xa7   : > { %699 = vmatmul.mubr.msk.f32.vlgmr.msra.gmra.mrb[0].mxu0 %vm399_vm9, %v1006_v49 }
 0x175   : > { %474 = sbr.rel (!%p1220_p6) target bundleno = 380 (0x17c), region = 40 }
 0x17a   : > { %v468_v50 = vpop.f32.mrb[0].mxu0 }
 0x17b   : > { %v700_v51 = vpop.f32.mrb[1].mxu0  ;;  %476 = vst.msk [vmem:[#allocation2] sm:$0xff] (%p1220_p6), %vm475_vm10, %v468_v50 }
 0x17c PF: > { %479 = sbr.rel (%p1220_p6) target bundleno = 390 (0x186), region = 44  ;;  %vm482_vm11 = vcmask (!%p1220_p6), 261120  }
 0x182   : > { %v480_v52 = vld [vmem:[#allocation2] sm:$0xff] (!%p1220_p6) }
 0x183   : > { %v481_v53 = vadd.f32 %v480_v52, %v468_v50 }
 0x185   : > { %483 = vst.msk [vmem:[#allocation2] sm:$0xff] %vm482_vm11, %v481_v53 }
 0x186 PF: > { %p485_p9 = pnand %p623_p8, %p1220_p6 }
 0x187   : > { %vm489_vm12 = vcmask (!%p485_p9), 261120   ;;  %v1007_v54 = vmov (!%p485_p9), 0.0  }
 0x188   : > { %488 = sbr.rel (%p485_p9) target bundleno = 399 (0x18f), region = 48  ;;  %490 = vst.msk [vmem:[#allocation2] sm:$0xff] (!%p485_p9), %vm489_vm12, %v1007_v54 }
 0x18f PF: > { %493 = sbr.rel (!%p1224_p7) target bundleno = 406 (0x196), region = 52  ;;  %v494_v55 = vld [vmem:[#allocation2] sm:$0xff] (%p1224_p7)  ;;  %vm495_vm13 = vcmask (%p1224_p7), 261120  }
 0x190   : > { %496 = vst.msk [vmem:[%s245_s22] sm:$0xff] (%p1224_p7), %vm495_vm13, %v494_v55 }
 0x196 PF: > { %s734_s24 = scalar_select %p1127_p10, [#allocation4], [#allocation11] }
 0x197   : > { %s1409_s16 = smov (!%p1127_p10, %s987_s16), 0  ;;  %s515_s8 = sshll.u32 %s245_s22, 4  ;;  %s1320_s8 = int_to_ptr.vmem [resolvable:$true] %s515_s8 }
 0x198   : > { %s507_s6 = sld [smem:[%s734_s24 + %s1409_s16]]  ;;  %s498_s28 = scalar_lea.sflag [#allocation9], %s243_s27 }
 0x199   : > { %s887_s23 = scalar_lea.vmem %s1320_s8, 128  ;;  %s1008_s16 = smov [#allocation10]  }
 0x19a   : > { %p888_p12 = scmp.ne.s32.totalorder %s1320_s8, %s887_s23  ;;  %s891_s29 = sshll.u32 %s1008_s16, 4  ;;  %s892_s29 = int_to_ptr.vmem [resolvable:$false] %s891_s29 }
 0x19b   : > { %s893_s22 = scalar_lea.vmem %s892_s29, 256  ;;  %p894_p5 = scmp.lt.s32.totalorder %s1320_s8, %s892_s29 }
 0x19c   : > { %p889_p11 = pnand %p888_p12, %p1127_p10  ;;  %p895_p1 = scmp.lt.s32.totalorder %s893_s22, %s887_s23 }
 0x19e   : > { %s645_s26 = sshll.u32 %s507_s6, 7  ;;  %p890_p0 = pneg %p889_p11 }
 0x19f   : > { %s513_s20 = scalar_lea.hbm %s1378_s5, %s645_s26  ;;  %p896_p13 = por %p895_p1, %p894_p5 }
 0x1a1   : > { %p897_p2 = pnand %p896_p13, %p890_p0 }
 0x1a3   : > { %900 = shalt.err (!%p897_p2)
}
 0x1a4   : > { %s901_s0 = scalar_lea.hbm %s513_s20, 128  ;;  %s905_s25 = scalar_lea.hbm %s1378_s5, 128 }
 0x1a5   : > { %p902_p3 = scmp.ne.s32.totalorder %s513_s20, %s901_s0  ;;  %p906_p8 = scmp.lt.u32.totalorder %s513_s20, %s1378_s5 }
 0x1a6   : > { %p907_p4 = scmp.lt.u32.totalorder %s905_s25, %s901_s0  ;;  %p909_p12 = scmp.lt.u32.totalorder %s901_s0, %s513_s20 }
 0x1a7   : > { %p903_p6 = pnand %p902_p3, %p1127_p10 }
 0x1a8   : > { %p908_p9 = por %p907_p4, %p906_p8 }
 0x1a9   : > { %p904_p7 = pneg %p903_p6 }
 0x1aa   : > { %p910_p11 = por %p909_p12, %p908_p9 }
 0x1ac   : > { %p911_p0 = pnand %p910_p11, %p904_p7 }
 0x1ae   : > { %914 = shalt.err (!%p911_p0)
}
 0x1af   : > { %736 = dma.vmem_to_hbm [thread:$0]  (%p1127_p10), %s1320_s8, 128, %s513_s20, %s498_s28  }
 0x1b0 PF: > { %s527_s26 = sand.u32 1, %s963_s2   ;;  %p1388_p5 = scmp.ne.s32.totalorder %s1385_s7, 0 }
 0x1b1   : > { %p1389_p1 = scmp.ge.s32.totalorder %s995_s18, 2  ;;  %s528_s19 = scalar_lea.sflag [#allocation9], %s527_s26 }
 0x1b3   : > { %p739_p13 = pnand %p1389_p1, %p1388_p5 }
 0x1b5   : > { %958 = dma.done.wait (!%p739_p13), %s528_s19, 128  }
 0x1b6   : > { %960 = vsyncadd (!%p739_p13), %s528_s19, 4294967168  ;;  %s33_s18 = sadd.s32 1, %s995_s18   ;;  %s1390_s2 = smov %s967_s11 }
 0x1b7   : > { %p30_p2 = scmp.ge.s32.totalorder %s33_s18, 4   ;;  %s1391_s11 = smov %s971_s12 }
 0x1b8   : > { %s1392_s12 = smov %s1139_s10  ;;  %s1393_s13 = smov %s979_s14 }
 0x1b9   : > { %s1394_s14 = smov %s983_s15  ;;  %s1395_s15 = smov %s1136_s9 }
 0x1ba   : > { %s1396_s16 = smov %s991_s17  ;;  %s1397_s17 = smov %s1399_s21 }
 0x1bb   :  { %32 = sbr.rel (!%p30_p2) target bundleno = 41 (0x29), region = 96 }
 0x1c2   :  { %533 = vsyncpa [#allocation8], 1 }
 0x1c3   :  { %535 = vsyncpa [#allocation8 + $0x1], 1 }
 0x1c4   :  { %536 = vsyncpa [#allocation9], 1 }
 0x1c5   :  { %538 = vsyncpa [#allocation9 + $0x1], 1 }

</bundles_post_ra>
